<compile_context>
chip_gen: v7x
topology: tpu7x:2x2x1
jax: 0.10.0
libtpu: 0.0.40
codegen_flags: <defaults>
</compile_context>

<pallas_src>
import jax
import jax.numpy as jnp
from jax.experimental import pallas as pl
from jax.experimental.pallas import tpu as pltpu


def _round_up(a: int, m: int) -> int:
    return (a + m - 1) // m * m


def _mlp_kernel(x_ref, w1_ref, b1_ref, w2_ref, b2_ref, o_ref):
    # Hidden layer: bf16 matmul on MXU with f32 accumulation.
    h = jnp.dot(x_ref[...], w1_ref[...], preferred_element_type=jnp.float32)
    # Bias add + ReLU in f32 on the VPU.
    h = jnp.maximum(h + b1_ref[...], 0.0)
    # Output layer: cast activations to bf16 for the MXU, accumulate in f32.
    out = jnp.dot(h.astype(jnp.bfloat16), w2_ref[...],
                  preferred_element_type=jnp.float32)
    # bf16 store halves the lane-dense output-slab writeback.
    o_ref[...] = (out + b2_ref[...]).astype(o_ref.dtype)


def prepare_params(w1, b1, w2, b2):
    """One-time padding + bf16 cast of the weights/biases (call once, reuse).

    w1: (obs, hidden)  b1: (hidden,) or (1, hidden)
    w2: (hidden, n_actions)  b2: (n_actions,) or (1, n_actions)
    Returns a tuple of padded arrays (w1p, b1p, w2p, b2p):
      w1p: (k_pad, h_pad) bf16   b1p: (1, h_pad) f32
      w2p: (h_pad, n_pad) bf16   b2p: (1, n_pad) f32
    """
    obs, hidden = w1.shape
    n_actions = w2.shape[1]
    k_pad = max(16, _round_up(obs, 16))          # bf16 packs 2 rows / sublane
    h_pad = max(128, _round_up(hidden, 128))     # lane-dense hidden
    n_pad = max(128, _round_up(n_actions, 128))  # lane-dense output slab

    bf16 = jnp.bfloat16
    b1 = jnp.asarray(b1, jnp.float32).reshape(1, -1)
    b2 = jnp.asarray(b2, jnp.float32).reshape(1, -1)
    w1p = jnp.pad(w1.astype(bf16), ((0, k_pad - obs), (0, h_pad - hidden)))
    b1p = jnp.pad(b1, ((0, 0), (0, h_pad - hidden)))
    w2p = jnp.pad(w2.astype(bf16), ((0, h_pad - hidden), (0, n_pad - n_actions)))
    b2p = jnp.pad(b2, ((0, 0), (0, n_pad - n_actions)))
    return (w1p, b1p, w2p, b2p)


def _choose_tile_b(B: int, tile_b_max: int) -> int:
    """Batch tile: multiple of 16, <= tile_b_max, >= 2 tiles when B > 16."""
    tmax = max(16, (tile_b_max // 16) * 16)
    want_tiles = pl.cdiv(_round_up(B, 16), tmax)
    if B > 16:
        want_tiles = max(want_tiles, 2)   # let v7x's 2nd TensorCore work
    tile_b = _round_up(pl.cdiv(B, want_tiles), 16)
    return min(max(tile_b, 16), tmax)


def net_forward(x, params, *, n_actions: int, tile_b_max: int = 512):
    """Forward pass of Net: relu(x @ w1 + b1) @ w2 + b2.

    x      : (B, obs_size) float32
    params : output of prepare_params (padded bf16/f32 weights)
    returns (B, n_actions) float32 logits (no softmax, matching the module).
    """
    w1p, b1p, w2p, b2p = params
    B, obs = x.shape
    k_pad, h_pad = w1p.shape
    n_pad = w2p.shape[1]

    tile_b = _choose_tile_b(B, tile_b_max)
    b_pad = _round_up(B, tile_b)
    grid = (b_pad // tile_b,)

    # Per-call activation pad + bf16 cast; allow_input_fusion lets XLA fuse
    # this directly into the pallas_call input instead of a separate HBM op.
    xp = jnp.pad(x.astype(jnp.bfloat16), ((0, b_pad - B), (0, k_pad - obs)))

    cost = pl.CostEstimate(
        flops=2 * b_pad * (k_pad * h_pad + h_pad * n_pad),
        transcendentals=0,
        bytes_accessed=(xp.size * 2 + w1p.size * 2 + w2p.size * 2
                        + b1p.size * 4 + b2p.size * 4 + b_pad * n_pad * 2),
    )

    out_padded = pl.pallas_call(
        _mlp_kernel,
        out_shape=jax.ShapeDtypeStruct((b_pad, n_pad), jnp.bfloat16),
        grid_spec=pltpu.PrefetchScalarGridSpec(
            num_scalar_prefetch=0,
            grid=grid,
            in_specs=[
                # x: tiled over the batch grid (software-pipelined).
                pl.BlockSpec((tile_b, k_pad), lambda i: (i, 0)),
                # Weights / biases: whole-array, resident across all steps.
                pl.BlockSpec((k_pad, h_pad), lambda i: (0, 0)),
                pl.BlockSpec((1, h_pad), lambda i: (0, 0)),
                pl.BlockSpec((h_pad, n_pad), lambda i: (0, 0)),
                pl.BlockSpec((1, n_pad), lambda i: (0, 0)),
            ],
            out_specs=pl.BlockSpec((tile_b, n_pad), lambda i: (i, 0)),
        ),
        compiler_params=pltpu.CompilerParams(
            dimension_semantics=("parallel",),
            vmem_limit_bytes=32 * 1024 * 1024,
            allow_input_fusion=[True, False, False, False, False],
        ),
        cost_estimate=cost,
    )(xp, w1p, b1p, w2p, b2p)

    # Slice the real logits back out of the lane-dense slab, upcast to f32.
    return out_padded[:B, :n_actions].astype(jnp.float32)


def init_params(key, obs_size, hidden_size, n_actions):
    """Deterministic init mimicking torch.nn.Linear default (U[-1/sqrt(in), 1/sqrt(in)])."""
    k1, k2, k3, k4 = jax.random.split(key, 4)
    lim1 = 1.0 / jnp.sqrt(jnp.float32(obs_size))
    lim2 = 1.0 / jnp.sqrt(jnp.float32(hidden_size))
    w1 = jax.random.uniform(k1, (obs_size, hidden_size), jnp.float32, -lim1, lim1)
    b1 = jax.random.uniform(k2, (1, hidden_size), jnp.float32, -lim1, lim1)
    w2 = jax.random.uniform(k3, (hidden_size, n_actions), jnp.float32, -lim2, lim2)
    b2 = jax.random.uniform(k4, (1, n_actions), jnp.float32, -lim2, lim2)
    return w1, b1, w2, b2


if __name__ == "__main__":
    # CartPole-like sizes: obs_size=4, hidden_size=128, n_actions=2, batch=32
    # (batch > 16 exercises the multi-tile / 2-TensorCore path).
    obs_size, hidden_size, n_actions, batch = 4, 128, 2, 32

    key = jax.random.PRNGKey(0)
    kx, kp = jax.random.split(key)
    x = jax.random.normal(kx, (batch, obs_size), jnp.float32)
    w1, b1, w2, b2 = init_params(kp, obs_size, hidden_size, n_actions)

    # One-time weight preparation (hoisted out of the per-step forward).
    params = prepare_params(w1, b1, w2, b2)

    fwd = jax.jit(net_forward, static_argnames=("n_actions", "tile_b_max"))
    out = fwd(x, params, n_actions=n_actions)
    jax.block_until_ready(out)

    # Reference check in plain JAX (f32). bf16 MXU operands + bf16 output
    # store => looser tolerance than pure f32.
    ref = jnp.maximum(x @ w1 + b1, 0.0) @ w2 + b2
    assert out.shape == (batch, n_actions)
    assert jnp.allclose(out, ref, atol=3e-2, rtol=3e-2), (
        f"max abs err {jnp.max(jnp.abs(out - ref))}")

    print("KERNEL_OK")
</pallas_src>

<mosaic_0001>
module attributes {stable_mosaic.version = 11 : i64} {
  func.func @_mlp_kernel(%arg0: i32, %arg1: memref<16x16xbf16, #tpu.memory_space<vmem>>, %arg2: memref<16x128xbf16, #tpu.memory_space<vmem>>, %arg3: memref<1x128xf32, #tpu.memory_space<vmem>>, %arg4: memref<128x128xbf16, #tpu.memory_space<vmem>>, %arg5: memref<1x128xf32, #tpu.memory_space<vmem>>, %arg6: memref<16x128xbf16, #tpu.memory_space<vmem>>) attributes {dimension_semantics = [#tpu.dimension_semantics<parallel>], iteration_bounds = array<i64: 2>, scalar_prefetch = 0 : i64, scratch_operands = 0 : i64, tpu.core_type = #tpu.core_type<tc>, window_params = [{transform_indices = @transform_0, window_bounds = array<i64: 16, 16>}, {pipeline_mode = #tpu.pipeline_mode<synchronous>, transform_indices = @transform_1, window_bounds = array<i64: 16, 128>}, {pipeline_mode = #tpu.pipeline_mode<synchronous>, transform_indices = @transform_2, window_bounds = array<i64: 1, 128>}, {pipeline_mode = #tpu.pipeline_mode<synchronous>, transform_indices = @transform_3, window_bounds = array<i64: 128, 128>}, {pipeline_mode = #tpu.pipeline_mode<synchronous>, transform_indices = @transform_4, window_bounds = array<i64: 1, 128>}, {transform_indices = @transform_5, window_bounds = array<i64: 16, 128>}]} {
    %c0 = arith.constant 0 : index
    %c0_0 = arith.constant 0 : index
    %0 = vector.load %arg1[%c0, %c0_0] : memref<16x16xbf16, #tpu.memory_space<vmem>>, vector<16x16xbf16>
    %c0_1 = arith.constant 0 : index
    %c0_2 = arith.constant 0 : index
    %1 = vector.load %arg2[%c0_1, %c0_2] : memref<16x128xbf16, #tpu.memory_space<vmem>>, vector<16x128xbf16>
    %cst = arith.constant dense<0.000000e+00> : vector<16x128xf32>
    %2 = tpu.matmul %0, %1, %cst {dimension_numbers = #tpu.dot_dimension_numbers<[1], [0], [0], [1], [0, 0, 1, 1], [], []>} : vector<16x16xbf16>, vector<16x128xbf16>, vector<16x128xf32> -> vector<16x128xf32>
    %c0_3 = arith.constant 0 : index
    %c0_4 = arith.constant 0 : index
    %3 = vector.load %arg3[%c0_3, %c0_4] : memref<1x128xf32, #tpu.memory_space<vmem>>, vector<1x128xf32>
    %4 = vector.broadcast %3 : vector<1x128xf32> to vector<16x128xf32>
    %5 = arith.addf %2, %4 : vector<16x128xf32>
    %cst_5 = arith.constant 0.000000e+00 : f32
    %6 = vector.broadcast %cst_5 : f32 to vector<16x128xf32>
    %7 = arith.maximumf %5, %6 : vector<16x128xf32>
    %8 = arith.truncf %7 : vector<16x128xf32> to vector<16x128xbf16>
    %c0_6 = arith.constant 0 : index
    %c0_7 = arith.constant 0 : index
    %9 = vector.load %arg4[%c0_6, %c0_7] : memref<128x128xbf16, #tpu.memory_space<vmem>>, vector<128x128xbf16>
    %cst_8 = arith.constant dense<0.000000e+00> : vector<16x128xf32>
    %10 = tpu.matmul %8, %9, %cst_8 {dimension_numbers = #tpu.dot_dimension_numbers<[1], [0], [0], [1], [0, 0, 1, 1], [], []>} : vector<16x128xbf16>, vector<128x128xbf16>, vector<16x128xf32> -> vector<16x128xf32>
    %c0_9 = arith.constant 0 : index
    %c0_10 = arith.constant 0 : index
    %11 = vector.load %arg5[%c0_9, %c0_10] : memref<1x128xf32, #tpu.memory_space<vmem>>, vector<1x128xf32>
    %12 = vector.broadcast %11 : vector<1x128xf32> to vector<16x128xf32>
    %13 = arith.addf %10, %12 : vector<16x128xf32>
    %14 = arith.truncf %13 : vector<16x128xf32> to vector<16x128xbf16>
    %c0_11 = arith.constant 0 : index
    %c0_12 = arith.constant 0 : index
    %15 = vector.load %arg6[%c0_11, %c0_12] : memref<16x128xbf16, #tpu.memory_space<vmem>>, vector<16x128xbf16>
    tpu.vector_store %arg6[%c0_11, %c0_12], %14 {strides = array<i32>} : memref<16x128xbf16, #tpu.memory_space<vmem>>, vector<16x128xbf16>,
    return
  }
  func.func @transform_0(%arg0: i32) -> (i32, i32) {
    %c0_i32 = arith.constant 0 : i32
    %c0_i32_0 = arith.constant 0 : i32
    return %arg0, %c0_i32 : i32, i32
  }
  func.func @transform_1(%arg0: i32) -> (i32, i32) {
    %c0_i32 = arith.constant 0 : i32
    %c0_i32_0 = arith.constant 0 : i32
    %c0_i32_1 = arith.constant 0 : i32
    return %c0_i32, %c0_i32_0 : i32, i32
  }
  func.func @transform_2(%arg0: i32) -> (i32, i32) {
    %c0_i32 = arith.constant 0 : i32
    %c0_i32_0 = arith.constant 0 : i32
    %c0_i32_1 = arith.constant 0 : i32
    return %c0_i32, %c0_i32_0 : i32, i32
  }
  func.func @transform_3(%arg0: i32) -> (i32, i32) {
    %c0_i32 = arith.constant 0 : i32
    %c0_i32_0 = arith.constant 0 : i32
    %c0_i32_1 = arith.constant 0 : i32
    return %c0_i32, %c0_i32_0 : i32, i32
  }
  func.func @transform_4(%arg0: i32) -> (i32, i32) {
    %c0_i32 = arith.constant 0 : i32
    %c0_i32_0 = arith.constant 0 : i32
    %c0_i32_1 = arith.constant 0 : i32
    return %c0_i32, %c0_i32_0 : i32, i32
  }
  func.func @transform_5(%arg0: i32) -> (i32, i32) {
    %c0_i32 = arith.constant 0 : i32
    %c0_i32_0 = arith.constant 0 : i32
    return %arg0, %c0_i32 : i32, i32
  }
}

</mosaic_0001>

<bundles_post_ra>
// kernel: net_forward.2
= control target key start
LH: loop header
LB: loop body
LE: loop exit
PB: predicated region body
PF: predicated region fallthrough
CT: control target
= control target key end

     0   :  { %s820_s0 = inlined_call_operand.vmem [shape: bf16[16,128], index: 0, kind: input, shape index: {}]   ;;  %s821_s1 = inlined_call_operand.vmem [shape: f32[1,128], index: 1, kind: input, shape index: {}]   ;;  %s822_s2 = inlined_call_operand.hbm [shape: bf16[128,128], index: 2, kind: input, shape index: {}]   ;;  %s823_s3 = inlined_call_operand.vmem [shape: f32[1,128], index: 3, kind: input, shape index: {}]   ;;  %s824_s4 = inlined_call_operand.vmem [shape: bf16[32,4], index: 4, kind: input, shape index: {}]   ;;  %s825_s5 = inlined_call_operand.<no memory space> [shape: bf16[], index: 5, kind: input, shape index: {}]   ;;  %s826_s6 = inlined_call_operand.vmem [shape: bf16[32,128], index: 6, kind: output, shape index: {}]  }
   0x1   :  { %v11_v0 = vstv %s825_s5 }
   0x2   :  { %v741_v1 = vunpack.i.l.bf16 %v11_v0 }
   0x3   :  { %16 = vsyncpa [#allocation8], 0  ;;  %s743_s23 = smov 0  }
   0x4 LB: > { %s552_s24 = sadd.s32 4294967295, %s696_s23   ;;  %p554_p0 = scmp.ge.s32.totalorder %s696_s23, 1  ;;  %s696_s23 = sphi %s743_s23, %s22_s23  }
   0x5   : > { %p163_p1 = scmp.lt.s32.totalorder %s696_s23, 3  ;;  %s698_s25 = smov [#allocation7]  }
   0x6   : > { %s181_s26 = sshll.u32 %s698_s25, 4  ;;  %p757_p3 = scmp.eq.s32.totalorder %s552_s24, 0  ;;  %s182_s26 = int_to_ptr.vmem [resolvable:$true] %s181_s26 }
   0x7   : > { %p751_p2 = pnand %p554_p0, %p163_p1  ;;  %s658_s7 = scalar_lea.hbm %s822_s2, 1024 }
   0x8   : > { %s831_s27 = scalar_select %p757_p3, 1, 0 }
   0x9   : > { %s830_s5 = scalar_select %p751_p2, 1, 0 }
   0xa   : > { %p629_p4 = pneg %p751_p2  ;;  %p659_p6 = scmp.ne.s32.totalorder %s822_s2, %s658_s7 }
   0xb   : > { %p665_p10 = scmp.lt.u32.totalorder %s658_s7, %s822_s2 }
   0xc   : > { %p765_p5 = pnand %p757_p3, %p629_p4 }
   0xe   : > { %p660_p7 = pneg %p765_p5 }
  0x10   : > { %p661_p8 = pnand %p660_p7, %p659_p6 }
  0x12   : > { %p662_p9 = pneg %p661_p8 }
  0x14   : > { %p667_p11 = pnand %p665_p10, %p662_p9 }
  0x16   : > { %670 = shalt.err (!%p667_p11)
}
  0x17   : > { %s671_s12 = scalar_lea.vmem %s182_s26, 1024  ;;  %p679_p1 = scmp.lt.s32.totalorder %s182_s26, %s182_s26 }
  0x18   : > { %p672_p12 = scmp.ne.s32.totalorder %s182_s26, %s671_s12  ;;  %p680_p4 = scmp.lt.s32.totalorder %s671_s12, %s671_s12 }
  0x1a   : > { %p674_p13 = pnand %p672_p12, %p660_p7  ;;  %p681_p3 = por %p680_p4, %p679_p1 }
  0x1c   : > { %p675_p0 = pneg %p674_p13 }
  0x1e   : > { %p682_p2 = pnand %p681_p3, %p675_p0 }
  0x20   : > { %685 = shalt.err (!%p682_p2)
}
  0x21   : > { %s699_s13 = smov 64   ;;  %s700_s14 = smov 4  }
  0x22   : > { %632 = dma.hbm_to_vmem [thread:$0]  (!%p765_p5), %s822_s2, 1024, %s182_s26, [#allocation8], %s699_s13, %s699_s13, %s700_s14  }
  0x23   : > { %p833_p6 = scmp.ne.s32.totalorder %s830_s5, 0 }
  0x25   : > { %209 = sbr.rel (%p833_p6) target bundleno = 506 (0x1fa), region = 40 }
  0x2c   : > { %p834_p8 = scmp.ne.s32.totalorder %s831_s27, 0 }
  0x2e   : > { %691 = dma.done.wait (%p834_p8), [#allocation8], 1024  }
  0x2f   : > { %693 = vsyncadd (%p834_p8), [#allocation8], 4294966272  ;;  %s559_s17 = sshll.u32 %s552_s24, 1  ;;  %v261_v2 = vlaneseq  ;;  %v701_v3 = vmov 0.0   ;;  %vm702_vm0 = vmmov 0   ;;  %v648_v5 = vld [vmem:[%s820_s0] sm:$0xff]  }
  0x30   : > { %599 = vmatprep.subr.bf16.mxu0 %v701_v3  ;;  %601 = vmatprep.mubr.msk.bf16.mxu0 %vm702_vm0, %v701_v3  ;;  %p238_p2 = scmp.lt.s32.totalorder %s559_s17, 3  ;;  %v650_v9 = vld [vmem:[#allocation7] sm:$0xff]   ;;  %v651_v12 = vld [vmem:[#allocation7 + $0x8] sm:$0xff]   ;;  %v652_v15 = vld [vmem:[#allocation7 + $0x10] sm:$0xff]   ;;  %vm314_vm2 = vcmask 130048  }
  0x31   : > { %605 = vmatprep.subr.bf16.mxu1 %v701_v3  ;;  %621 = vmatprep.mubr.msk.bf16.mxu1 %vm702_vm0, %v701_v3  ;;  %v262_v4 = vand.u32 127, %v261_v2  ;;  %v653_v16 = vld [vmem:[#allocation7 + $0x18] sm:$0xff]   ;;  %v654_v18 = vld [vmem:[#allocation7 + $0x20] sm:$0xff]   ;;  %v655_v19 = vld [vmem:[#allocation7 + $0x28] sm:$0xff]  }
  0x32   : > { %s836_s17 = smov (!%p238_p2, %s559_s17), 3  ;;  %600 = vmatpush3.bf16.msra.mxu0 %v648_v5  ;;  %606 = vmatpush3.bf16.msra.mxu1 %v650_v9  ;;  %v656_v20 = vld [vmem:[#allocation7 + $0x30] sm:$0xff]   ;;  %v657_v21 = vld [vmem:[#allocation7 + $0x38] sm:$0xff]   ;;  %v564_v22 = vld [vmem:[%s821_s1] ss:$0 sm:$0xff] }
  0x33   : > { %s560_s18 = sshll.u32 %s836_s17, 2  ;;  %vm264_vm1 = vcmp.lt.s32.totalorder %v262_v4, 4  ;;  %607 = vmatprep.subr.bf16.mxu1 %v701_v3  ;;  %v568_v32 = vld [vmem:[%s823_s3] ss:$0 sm:$0xff] }
  0x34   : > { %s241_s21 = scalar_lea.vmem %s824_s4, %s560_s18  ;;  %s247_s30 = scalar_lea.vmem %s826_s6, %s560_s18 }
  0x35   : > { %v258_v6 = vld [vmem:[%s241_s21] sm:$0xff]  }
  0x36   : > { %v259_v7 = vunpack.c.l.bf16 %v258_v6  ;;  %v280_v8 = vunpack.c.h.bf16 %v258_v6  ;;  %608 = vmatpush3.bf16.msra.mxu1 %v651_v12 }
  0x37   : > { %609 = vmatprep.subr.bf16.mxu1 %v701_v3 }
  0x38   : > { %v265_v10 = vsel %vm264_vm1, %v259_v7, %v741_v1  ;;  %v286_v11 = vsel %vm264_vm1, %v280_v8, %v741_v1 }
  0x39   : > { %v266_v13 = vpack.c.bf16 %v701_v3, %v265_v10  ;;  %v288_v14 = vpack.c.bf16 %v701_v3, %v286_v11 }
  0x3a   : > { %610 = vmatpush3.bf16.msra.mxu1 %v652_v15 }
  0x3b   : > { %268 = vst [vmem:[#allocation9] sm:$0xf] %v266_v13  ;;  %290 = vst [vmem:[#allocation9 + $0x4] sm:$0xf] %v288_v14  ;;  %611 = vmatprep.subr.bf16.mxu1 %v701_v3 }
  0x3e   : > { %612 = vmatpush3.bf16.msra.mxu1 %v653_v16 }
  0x3f   : > { %613 = vmatprep.subr.bf16.mxu1 %v701_v3 }
  0x42   : > { %v649_v17 = vld [vmem:[#allocation9] sm:$0xff]   ;;  %614 = vmatpush3.bf16.msra.mxu1 %v654_v18 }
  0x43   : > { %602 = vmatmul.mubr.msk.bf16.vlgmr.msra.gmra.mrb[0].mxu0 %vm314_vm2, %v649_v17  ;;  %615 = vmatprep.subr.bf16.mxu1 %v701_v3 }
  0x46   : > { %616 = vmatpush3.bf16.msra.mxu1 %v655_v19 }
  0x47   : > { %617 = vmatprep.subr.bf16.mxu1 %v701_v3 }
  0x4a   : > { %618 = vmatpush3.bf16.msra.mxu1 %v656_v20 }
  0x4b   : > { %619 = vmatprep.subr.bf16.mxu1 %v701_v3 }
  0x4e   : > { %620 = vmatpush3.bf16.msra.mxu1 %v657_v21 }
 0x116   : > { %v352_v23 = vpop.f32.mrb[0].mxu0 }
 0x117   : > { %v353_v24 = vadd.f32 %v564_v22, %v352_v23  ;;  %v603_v25 = vpop.f32.mrb[1].mxu0 }
 0x118   : > { %v355_v26 = vpop.f32.mrb[2].mxu0 }
 0x119   : > { %v356_v27 = vadd.f32 %v564_v22, %v355_v26  ;;  %v604_v28 = vpop.f32.mrb[3].mxu0  ;;  %v359_v29 = vmax.f32 %v353_v24, 0.0 }
 0x11b   : > { %v360_v30 = vmax.f32 %v356_v27, 0.0 }
 0x11d   : > { %v361_v31 = vpack.c.bf16 %v360_v30, %v359_v29 }
 0x11f   : > { %622 = vmatmul.mubr.bf16.vlgmr.msra.gmra.mrb[0].mxu1 %v361_v31 }
 0x1f2   : > { %v467_v33 = vpop.f32.mrb[0].mxu1 }
 0x1f3   : > { %v623_v34 = vpop.f32.mrb[1].mxu1  ;;  %v468_v36 = vadd.f32 %v568_v32, %v467_v33 }
 0x1f4   : > { %v470_v35 = vpop.f32.mrb[2].mxu1 }
 0x1f5   : > { %v471_v37 = vadd.f32 %v568_v32, %v470_v35  ;;  %v624_v38 = vpop.f32.mrb[3].mxu1 }
 0x1f7   : > { %v586_v39 = vpack.c.bf16 %v471_v37, %v468_v36 }
 0x1f9   : > { %587 = vst [vmem:[%s247_s30] sm:$0xff] %v586_v39  }
 0x1fa PF: > { %s22_s23 = sadd.s32 1, %s696_s23  }
 0x1fb   : > { %p19_p3 = scmp.ge.s32.totalorder %s22_s23, 4  }
 0x1fd   :  { %21 = sbr.rel (!%p19_p3) target bundleno = 4 (0x4), region = 77 }
 0x204   :  { %506 = vsyncpa [#allocation8], 1 }
 0x205   :  { %508 = vsyncpa [#allocation8 + $0x1], 1 }

</bundles_post_ra>
